<compile_context>
chip_gen: v6e
topology: v6e:2x2x1
jax: 0.10.0
libtpu: 0.0.40
codegen_flags: <defaults>
</compile_context>

<pallas_src>
import functools

import jax
import jax.numpy as jnp
import numpy as np
from jax import lax
from jax.experimental import pallas as pl
from jax.experimental.pallas import tpu as pltpu


def _round_up(x, m):
    return -(-x // m) * m


def _textcnn_kernel(emb_ref, w_ref, b_ref, o_ref, max_ref, *,
                    kernel_sizes, kernel_num, seq_len, t_chunk, n_chunks):
    """Fused conv-over-time (all branches, K-folded) + max-pool + bias + ReLU.

    emb_ref: (b_tile, L_pad, D)     embedded tokens (time zero-padded)
    w_ref:   (k_max*D, n_cols)      K-folded packed conv weights (zero padded)
    b_ref:   (1, n_cols)            packed conv bias (f32)
    o_ref:   (b_tile, n_cols)       pooled output (f32)
    max_ref: (b_tile, n_cols) f32   running max over time chunks (VMEM scratch)
    """
    k_max = max(kernel_sizes)
    bt, _, d = emb_ref.shape
    n_cols = w_ref.shape[-1]
    t_safe = seq_len - k_max + 1          # positions valid for every branch

    max_ref[...] = jnp.full(max_ref.shape, -jnp.inf, max_ref.dtype)

    # Valid conv positions per output column (branch j owns columns
    # [j*kernel_num, (j+1)*kernel_num)).  Lane-padding columns are never
    # masked: their weights/bias are exact zeros and they are sliced off by
    # the wrapper, so no -inf can leak into real outputs.
    col = lax.broadcasted_iota(jnp.int32, (t_chunk, n_cols), 1)
    valid_len = jnp.full((t_chunk, n_cols), n_chunks * t_chunk, jnp.int32)
    for j, k in enumerate(kernel_sizes):
        in_branch = (col >= j * kernel_num) & (col < (j + 1) * kernel_num)
        valid_len = jnp.where(in_branch, seq_len - k + 1, valid_len)

    # TODO(synk): switch to lax.fori_loop + pl.ds for very long sequences to
    # bound code size; the static loop keeps every slice start static/aligned.
    for c in range(n_chunks):
        t0 = c * t_chunk
        # im2col fold: k_max*D features per time step, one wide-K MXU matmul.
        parts = [
            emb_ref[:, t0 + i:t0 + i + t_chunk, :].reshape(bt * t_chunk, d)
            for i in range(k_max)
        ]
        lhs = jnp.concatenate(parts, axis=-1)               # (bt*Tc, k_max*D)
        conv = jnp.dot(lhs, w_ref[...],
                       preferred_element_type=jnp.float32)  # (bt*Tc, n_cols)
        conv = conv.reshape(bt, t_chunk, n_cols)
        if t0 + t_chunk > t_safe:   # only tail chunks reach invalid positions
            t_idx = t0 + lax.broadcasted_iota(jnp.int32, (t_chunk, n_cols), 0)
            conv = jnp.where((t_idx < valid_len)[None], conv, -jnp.inf)
        max_ref[...] = jnp.maximum(max_ref[...], conv.max(axis=1))

    # Bias + ReLU AFTER the pool (exact: ReLU monotone, bias time-invariant).
    o_ref[...] = jnp.maximum(max_ref[...] + b_ref[...], 0.0).astype(o_ref.dtype)


def _vmem_budget_bytes():
    """(kernel working-set budget, vmem_limit_bytes), generation aware."""
    try:
        cap = int(pltpu.get_tpu_info().vmem_capacity_bytes)
    except Exception:                      # conservative fallback
        cap = 64 * 1024 * 1024
    vmem_limit = min(cap * 3 // 4, 100 * 1024 * 1024)   # ~48 MiB v7x, ~96 MiB v5e/v6e
    return vmem_limit * 4 // 5, vmem_limit              # headroom for compiler temps


def _pick_batch_tile(B, l_pad, d, kd, t_chunk, n_cols, in_item, budget):
    """Largest 8-aligned batch tile whose full working set fits the budget."""
    row = (2 * l_pad * d * in_item        # emb block, double-buffered
           + 3 * n_cols * 4               # out block x2 + running-max scratch
           + t_chunk * kd * in_item       # im2col lhs temporary (one chunk)
           + 2 * t_chunk * n_cols * 4)    # matmul result + masked/max temps
    fixed = 2 * kd * n_cols * in_item + 2 * n_cols * 4 + (1 << 20)  # weights x2, bias, slack
    avail = max(budget - fixed, row)
    bt = max(int(avail // row), 1)
    if bt >= B:
        # Keep >= 2 grid steps so the "parallel" axis can feed both v7x cores.
        half = _round_up((B + 1) // 2, 8)
        return half if half < B else int(B)
    bt = max((bt // 8) * 8, 8)
    return int(min(bt, B))


def textcnn_fused(emb, w_packed, b_packed, kernel_sizes, kernel_num, *,
                  compute_dtype=jnp.bfloat16, b_tile=None, t_chunk=None):
    """emb: (B, L, D); w_packed: (k_max*D, n_cols); b_packed: (1, n_cols).

    Returns (B, kernel_num * len(kernel_sizes)) f32, matching torch.cat order.
    """
    B, L, D = emb.shape
    n_k = len(kernel_sizes)
    k_max, k_min = max(kernel_sizes), min(kernel_sizes)
    kd, n_cols = w_packed.shape
    t_all = L - k_min + 1

    # Time tiling: chunk is a multiple of 16 so the (b_tile, Tc, D) ->
    # (b_tile*Tc, D) collapse is sublane-tile aligned even for bf16.
    if t_chunk is None:
        t_chunk = min(_round_up(t_all, 16), 128)
    t_pad = _round_up(t_all, t_chunk)
    n_chunks = t_pad // t_chunk
    l_pad = t_pad + k_max - 1

    emb = emb.astype(compute_dtype)
    if l_pad > L:
        # Padding rows only feed (t, branch) positions masked to -inf pre-max.
        emb = jnp.pad(emb, ((0, 0), (0, l_pad - L), (0, 0)))
    w_packed = w_packed.astype(compute_dtype)
    b_packed = b_packed.astype(jnp.float32)   # epilogue stays f32
    in_item = jnp.dtype(compute_dtype).itemsize

    budget, vmem_limit = _vmem_budget_bytes()
    if b_tile is None:
        b_tile = _pick_batch_tile(B, l_pad, D, kd, t_chunk, n_cols, in_item,
                                  budget)

    kernel = functools.partial(
        _textcnn_kernel, kernel_sizes=tuple(kernel_sizes),
        kernel_num=kernel_num, seq_len=L, t_chunk=t_chunk, n_chunks=n_chunks)

    cost = pl.CostEstimate(
        flops=2 * B * t_pad * kd * n_cols,
        transcendentals=0,
        bytes_accessed=((B * l_pad * D + kd * n_cols) * in_item
                        + n_cols * 4 + B * n_cols * 4))

    out_padded = pl.pallas_call(
        kernel,
        out_shape=jax.ShapeDtypeStruct((B, n_cols), jnp.float32),
        grid=(pl.cdiv(B, b_tile),),
        in_specs=[
            pl.BlockSpec((b_tile, l_pad, D), lambda i: (i, 0, 0)),
            # Constant index_map -> Pallas fetches weights/bias once and keeps
            # them resident across grid steps.
            # TODO(synk): pipeline_mode=pl.Buffered(1) would also drop their
            # second pipeline buffer (skipped here as a lowering risk).
            pl.BlockSpec((kd, n_cols), lambda i: (0, 0)),
            pl.BlockSpec((1, n_cols), lambda i: (0, 0)),
        ],
        out_specs=pl.BlockSpec((b_tile, n_cols), lambda i: (i, 0)),
        scratch_shapes=[pltpu.VMEM((b_tile, n_cols), jnp.float32)],
        compiler_params=pltpu.CompilerParams(
            dimension_semantics=("parallel",),
            vmem_limit_bytes=vmem_limit),
        cost_estimate=cost,
    )(emb, w_packed, b_packed)

    # Branches are packed contiguously: one slice reproduces torch.cat order.
    return out_padded[:, :n_k * kernel_num]


def init_params(key, vocab_size, embed_dim, kernel_num, kernel_sizes):
    keys = jax.random.split(key, 1 + 2 * len(kernel_sizes))
    embedding = jax.random.normal(keys[0], (vocab_size, embed_dim), jnp.float32)
    convs = []
    for j, k in enumerate(kernel_sizes):
        wkey, bkey = keys[1 + 2 * j], keys[2 + 2 * j]
        # PyTorch Conv2d weight shape is (O, 1, k, D); stored here as (k, D, O).
        w = 0.1 * jax.random.normal(wkey, (k, embed_dim, kernel_num), jnp.float32)
        b = 0.1 * jax.random.normal(bkey, (1, kernel_num), jnp.float32)
        convs.append((w, b))
    return {"embedding": embedding, "convs": convs}


def pack_conv_params(convs, kernel_sizes, embed_dim):
    """Pack per-branch (k, D, O) weights / (1, O) biases into one K-folded
    (k_max*D, n_cols) weight and a (1, n_cols) bias, n_cols = round_up(total, 128)."""
    k_max = max(kernel_sizes)
    kernel_num = convs[0][0].shape[-1]
    n_cols = _round_up(kernel_num * len(kernel_sizes), 128)
    W = jnp.zeros((k_max * embed_dim, n_cols), jnp.float32)
    Bv = jnp.zeros((1, n_cols), jnp.float32)
    for j, (k, (w, b)) in enumerate(zip(kernel_sizes, convs)):
        c0 = j * kernel_num
        W = W.at[:k * embed_dim, c0:c0 + kernel_num].set(
            w.reshape(k * embed_dim, kernel_num))
        Bv = Bv.at[:, c0:c0 + kernel_num].set(b)
    return W, Bv


def textcnn_forward(token_ids, params, kernel_sizes, *,
                    compute_dtype=jnp.bfloat16):
    # Embedding lookup stays as an XLA gather.
    # TODO(synk): fuse the gather into the kernel (PrefetchScalarGridSpec with
    # token ids in SMEM + per-row DMA from the table) to remove one full HBM
    # write+read of the (B, L, D) activations (biggest relative win on v5e).
    emb = params["embedding"][token_ids]                  # (B, L, D)
    kernel_num = params["convs"][0][0].shape[-1]
    W, Bv = pack_conv_params(params["convs"], kernel_sizes, emb.shape[-1])
    return textcnn_fused(emb, W, Bv, kernel_sizes, kernel_num,
                         compute_dtype=compute_dtype)


def textcnn_reference(token_ids, params, kernel_sizes):
    """Pure-JAX reference mirroring the PyTorch forward."""
    emb = params["embedding"][token_ids]  # (B, L, D)
    B, L, D = emb.shape
    outs = []
    for k, (w, b) in zip(kernel_sizes, params["convs"]):
        O = w.shape[-1]
        T = L - k + 1
        rows = []
        for t in range(T):
            win = emb[:, t:t + k, :].reshape(B, k * D)
            rows.append(win @ w.reshape(k * D, O) + b[0])
        conv = jnp.stack(rows, axis=1)          # (B, T, O)
        conv = jnp.maximum(conv, 0.0)
        outs.append(jnp.max(conv, axis=1))      # (B, O)
    return jnp.concatenate(outs, axis=1)


if __name__ == "__main__":
    vocab_size = 50
    embed_dim = 32
    kernel_num = 8
    kernel_sizes = (3, 4, 5)
    batch = 2
    max_len = 16

    key = jax.random.PRNGKey(0)
    pkey, xkey = jax.random.split(key)
    params = init_params(pkey, vocab_size, embed_dim, kernel_num, kernel_sizes)
    token_ids = jax.random.randint(xkey, (batch, max_len), 0, vocab_size)

    ref = jax.block_until_ready(textcnn_reference(token_ids, params, kernel_sizes))

    # f32 path: matches the (f32) PyTorch forward up to rounding.
    out_f32 = jax.block_until_ready(
        textcnn_forward(token_ids, params, kernel_sizes,
                        compute_dtype=jnp.float32))
    np.testing.assert_allclose(np.asarray(out_f32), np.asarray(ref),
                               rtol=1e-5, atol=1e-5)
    assert out_f32.shape == (batch, kernel_num * len(kernel_sizes))

    # Default path: bf16 inputs / f32 MXU accumulation (v6e/v7x recommendation).
    out_bf16 = jax.block_until_ready(
        textcnn_forward(token_ids, params, kernel_sizes))
    np.testing.assert_allclose(np.asarray(out_bf16), np.asarray(ref),
                               rtol=3e-2, atol=3e-2)

    print("KERNEL_OK")
</pallas_src>

<mosaic_0001>
module attributes {stable_mosaic.version = 11 : i64} {
  func.func @_textcnn_kernel(%arg0: i32, %arg1: memref<2x20x32xf32, #tpu.memory_space<vmem>>, %arg2: memref<160x128xf32, #tpu.memory_space<vmem>>, %arg3: memref<1x128xf32, #tpu.memory_space<vmem>>, %arg4: memref<2x128xf32, #tpu.memory_space<vmem>>, %arg5: memref<2x128xf32, #tpu.memory_space<vmem>>) attributes {dimension_semantics = [#tpu.dimension_semantics<parallel>], iteration_bounds = array<i64: 1>, scalar_prefetch = 0 : i64, scratch_operands = 1 : i64, tpu.core_type = #tpu.core_type<tc>, window_params = [{transform_indices = @transform_0, window_bounds = array<i64: 2, 20, 32>}, {pipeline_mode = #tpu.pipeline_mode<synchronous>, transform_indices = @transform_1, window_bounds = array<i64: 160, 128>}, {pipeline_mode = #tpu.pipeline_mode<synchronous>, transform_indices = @transform_2, window_bounds = array<i64: 1, 128>}, {transform_indices = @transform_3, window_bounds = array<i64: 2, 128>}]} {
    %cst = arith.constant 0xFF800000 : f32
    %0 = vector.broadcast %cst : f32 to vector<2x128xf32>
    %c0 = arith.constant 0 : index
    %c0_0 = arith.constant 0 : index
    %1 = vector.load %arg5[%c0, %c0_0] : memref<2x128xf32, #tpu.memory_space<vmem>>, vector<2x128xf32>
    tpu.vector_store %arg5[%c0, %c0_0], %0 {strides = array<i32>} : memref<2x128xf32, #tpu.memory_space<vmem>>, vector<2x128xf32>,
    %2 = tpu.iota {dimensions = array<i32: 1>} : vector<16x128xi32>
    %c16_i32 = arith.constant 16 : i32
    %3 = vector.broadcast %c16_i32 : i32 to vector<16x128xi32>
    %c0_i32 = arith.constant 0 : i32
    %4 = vector.broadcast %c0_i32 : i32 to vector<16x128xi32>
    %5 = arith.cmpi sge, %2, %4 : vector<16x128xi32>
    %c8_i32 = arith.constant 8 : i32
    %6 = vector.broadcast %c8_i32 : i32 to vector<16x128xi32>
    %7 = arith.cmpi slt, %2, %6 : vector<16x128xi32>
    %8 = arith.andi %5, %7 : vector<16x128xi1>
    %c14_i32 = arith.constant 14 : i32
    %9 = vector.broadcast %c14_i32 : i32 to vector<16x128xi32>
    %10 = arith.select %8, %9, %3 : vector<16x128xi1>, vector<16x128xi32>
    %c8_i32_1 = arith.constant 8 : i32
    %11 = vector.broadcast %c8_i32_1 : i32 to vector<16x128xi32>
    %12 = arith.cmpi sge, %2, %11 : vector<16x128xi32>
    %c16_i32_2 = arith.constant 16 : i32
    %13 = vector.broadcast %c16_i32_2 : i32 to vector<16x128xi32>
    %14 = arith.cmpi slt, %2, %13 : vector<16x128xi32>
    %15 = arith.andi %12, %14 : vector<16x128xi1>
    %c13_i32 = arith.constant 13 : i32
    %16 = vector.broadcast %c13_i32 : i32 to vector<16x128xi32>
    %17 = arith.select %15, %16, %10 : vector<16x128xi1>, vector<16x128xi32>
    %c16_i32_3 = arith.constant 16 : i32
    %18 = vector.broadcast %c16_i32_3 : i32 to vector<16x128xi32>
    %19 = arith.cmpi sge, %2, %18 : vector<16x128xi32>
    %c24_i32 = arith.constant 24 : i32
    %20 = vector.broadcast %c24_i32 : i32 to vector<16x128xi32>
    %21 = arith.cmpi slt, %2, %20 : vector<16x128xi32>
    %22 = arith.andi %19, %21 : vector<16x128xi1>
    %c12_i32 = arith.constant 12 : i32
    %23 = vector.broadcast %c12_i32 : i32 to vector<16x128xi32>
    %24 = arith.select %22, %23, %17 : vector<16x128xi1>, vector<16x128xi32>
    %c0_4 = arith.constant 0 : index
    %c0_5 = arith.constant 0 : index
    %c0_6 = arith.constant 0 : index
    %25 = vector.load %arg1[%c0_4, %c0_5, %c0_6] : memref<2x20x32xf32, #tpu.memory_space<vmem>>, vector<2x16x32xf32>
    %26 = vector.shape_cast %25 : vector<2x16x32xf32> to vector<32x32xf32>
    %c0_7 = arith.constant 0 : index
    %c1 = arith.constant 1 : index
    %c0_8 = arith.constant 0 : index
    %27 = vector.load %arg1[%c0_7, %c1, %c0_8] : memref<2x20x32xf32, #tpu.memory_space<vmem>>, vector<2x16x32xf32>
    %28 = vector.shape_cast %27 : vector<2x16x32xf32> to vector<32x32xf32>
    %c0_9 = arith.constant 0 : index
    %c2 = arith.constant 2 : index
    %c0_10 = arith.constant 0 : index
    %29 = vector.load %arg1[%c0_9, %c2, %c0_10] : memref<2x20x32xf32, #tpu.memory_space<vmem>>, vector<2x16x32xf32>
    %30 = vector.shape_cast %29 : vector<2x16x32xf32> to vector<32x32xf32>
    %c0_11 = arith.constant 0 : index
    %c3 = arith.constant 3 : index
    %c0_12 = arith.constant 0 : index
    %31 = vector.load %arg1[%c0_11, %c3, %c0_12] : memref<2x20x32xf32, #tpu.memory_space<vmem>>, vector<2x16x32xf32>
    %32 = vector.shape_cast %31 : vector<2x16x32xf32> to vector<32x32xf32>
    %c0_13 = arith.constant 0 : index
    %c4 = arith.constant 4 : index
    %c0_14 = arith.constant 0 : index
    %33 = vector.load %arg1[%c0_13, %c4, %c0_14] : memref<2x20x32xf32, #tpu.memory_space<vmem>>, vector<2x16x32xf32>
    %34 = vector.shape_cast %33 : vector<2x16x32xf32> to vector<32x32xf32>
    %35 = tpu.concatenate %26, %28, %30, %32, %34 in 1 : vector<32x32xf32>, vector<32x32xf32>, vector<32x32xf32>, vector<32x32xf32>, vector<32x32xf32> -> vector<32x160xf32>
    %c0_15 = arith.constant 0 : index
    %c0_16 = arith.constant 0 : index
    %36 = vector.load %arg2[%c0_15, %c0_16] : memref<160x128xf32, #tpu.memory_space<vmem>>, vector<160x128xf32>
    %cst_17 = arith.constant dense<0.000000e+00> : vector<32x128xf32>
    %37 = tpu.matmul %35, %36, %cst_17 {dimension_numbers = #tpu.dot_dimension_numbers<[1], [0], [0], [1], [0, 0, 1, 1], [], []>} : vector<32x160xf32>, vector<160x128xf32>, vector<32x128xf32> -> vector<32x128xf32>
    %38 = vector.shape_cast %37 : vector<32x128xf32> to vector<2x16x128xf32>
    %39 = tpu.iota {dimensions = array<i32: 0>} : vector<16x128xi32>
    %c0_i32_18 = arith.constant 0 : i32
    %40 = vector.broadcast %c0_i32_18 : i32 to vector<16x128xi32>
    %41 = arith.addi %40, %39 : vector<16x128xi32>
    %42 = arith.cmpi slt, %41, %24 : vector<16x128xi32>
    %43 = vector.shape_cast %42 : vector<16x128xi1> to vector<1x16x128xi1>
    %cst_19 = arith.constant 0xFF800000 : f32
    %44 = vector.shape_cast %43 : vector<1x16x128xi1> to vector<1x16x128xi1>
    %45 = vector.broadcast %44 : vector<1x16x128xi1> to vector<2x16x128xi1>
    %46 = vector.broadcast %cst_19 : f32 to vector<2x16x128xf32>
    %47 = arith.select %45, %38, %46 : vector<2x16x128xi1>, vector<2x16x128xf32>
    %c0_20 = arith.constant 0 : index
    %c0_21 = arith.constant 0 : index
    %48 = vector.load %arg5[%c0_20, %c0_21] : memref<2x128xf32, #tpu.memory_space<vmem>>, vector<2x128xf32>
    %cst_22 = arith.constant dense<0xFF800000> : vector<2x128xf32>
    %49 = vector.multi_reduction <maximumf>, %47, %cst_22 [1] : vector<2x16x128xf32> to vector<2x128xf32>
    %50 = arith.maximumf %48, %49 : vector<2x128xf32>
    %c0_23 = arith.constant 0 : index
    %c0_24 = arith.constant 0 : index
    %51 = vector.load %arg5[%c0_23, %c0_24] : memref<2x128xf32, #tpu.memory_space<vmem>>, vector<2x128xf32>
    tpu.vector_store %arg5[%c0_23, %c0_24], %50 {strides = array<i32>} : memref<2x128xf32, #tpu.memory_space<vmem>>, vector<2x128xf32>,
    %c0_25 = arith.constant 0 : index
    %c0_26 = arith.constant 0 : index
    %52 = vector.load %arg5[%c0_25, %c0_26] : memref<2x128xf32, #tpu.memory_space<vmem>>, vector<2x128xf32>
    %c0_27 = arith.constant 0 : index
    %c0_28 = arith.constant 0 : index
    %53 = vector.load %arg3[%c0_27, %c0_28] : memref<1x128xf32, #tpu.memory_space<vmem>>, vector<1x128xf32>
    %54 = vector.broadcast %53 : vector<1x128xf32> to vector<2x128xf32>
    %55 = arith.addf %52, %54 : vector<2x128xf32>
    %cst_29 = arith.constant 0.000000e+00 : f32
    %56 = vector.broadcast %cst_29 : f32 to vector<2x128xf32>
    %57 = arith.maximumf %55, %56 : vector<2x128xf32>
    %c0_30 = arith.constant 0 : index
    %c0_31 = arith.constant 0 : index
    %58 = vector.load %arg4[%c0_30, %c0_31] : memref<2x128xf32, #tpu.memory_space<vmem>>, vector<2x128xf32>
    tpu.vector_store %arg4[%c0_30, %c0_31], %57 {strides = array<i32>} : memref<2x128xf32, #tpu.memory_space<vmem>>, vector<2x128xf32>,
    return
  }
  func.func @transform_0(%arg0: i32) -> (i32, i32, i32) {
    %c0_i32 = arith.constant 0 : i32
    %c0_i32_0 = arith.constant 0 : i32
    %c0_i32_1 = arith.constant 0 : i32
    return %arg0, %c0_i32, %c0_i32_0 : i32, i32, i32
  }
  func.func @transform_1(%arg0: i32) -> (i32, i32) {
    %c0_i32 = arith.constant 0 : i32
    %c0_i32_0 = arith.constant 0 : i32
    %c0_i32_1 = arith.constant 0 : i32
    return %c0_i32, %c0_i32_0 : i32, i32
  }
  func.func @transform_2(%arg0: i32) -> (i32, i32) {
    %c0_i32 = arith.constant 0 : i32
    %c0_i32_0 = arith.constant 0 : i32
    %c0_i32_1 = arith.constant 0 : i32
    return %c0_i32, %c0_i32_0 : i32, i32
  }
  func.func @transform_3(%arg0: i32) -> (i32, i32) {
    %c0_i32 = arith.constant 0 : i32
    %c0_i32_0 = arith.constant 0 : i32
    return %arg0, %c0_i32 : i32, i32
  }
}

</mosaic_0001>

<bundles_post_ra>
// kernel: tpu_custom_call.1
= control target key start
LH: loop header
LB: loop body
LE: loop exit
PB: predicated region body
PF: predicated region fallthrough
CT: control target
= control target key end

     0   :  { %8 = vsyncpa [#allocation4], 0  ;;  %s589_s0 = inlined_call_operand.vmem [shape: f32[2,20,32], index: 0, kind: input, shape index: {}]   ;;  %s590_s1 = inlined_call_operand.hbm [shape: f32[160,128], index: 1, kind: input, shape index: {}]   ;;  %s591_s2 = inlined_call_operand.vmem [shape: f32[1,128], index: 2, kind: input, shape index: {}]   ;;  %s592_s3 = inlined_call_operand.hbm [shape: f32[2,128], index: 3, kind: output, shape index: {}]  }
   0x1   :  { %9 = vsyncpa [#allocation5], 0  ;;  %s434_s12 = smov [#allocation3]  }
   0x2   :  { %s17_s13 = sshll.u32 %s434_s12, 4  ;;  %s18_s13 = int_to_ptr.vmem [resolvable:$true] %s17_s13 }
   0x3   :  { %s398_s14 = scalar_lea.vmem %s18_s13, 2560  ;;  %p403_p1 = scmp.lt.s32.totalorder %s18_s13, %s18_s13 }
   0x4   :  { %p399_p0 = scmp.ne.s32.totalorder %s18_s13, %s398_s14  ;;  %p404_p2 = scmp.lt.s32.totalorder %s398_s14, %s398_s14 }
   0x6   :  { %p405_p3 = por %p404_p2, %p403_p1 }
   0x8   :  { %p406_p4 = pnand %p405_p3, %p399_p0 }
   0xa   :  { %409 = shalt.err (!%p406_p4)
}
   0xb   :  { %s435_s15 = smov 128   ;;  %s436_s16 = smov 8  }
   0xc   :  { %23 = dma.hbm_to_vmem [thread:$0]  %s590_s1, 2560, %s18_s13, [#allocation4], %s435_s15, %s435_s15, %s436_s16  }
   0xd   :  { %430 = dma.done.wait [#allocation4], 2560  }
   0xe   :  { %431 = vsyncadd [#allocation4], 4294964736  ;;  %v437_v0 = vmov 0.0   ;;  %v48_v1 = vld [vmem:[%s589_s0 + $0x1] sm:$0xff]  ;;  %v50_v2 = vld [vmem:[%s589_s0 + $0x19] sm:$0xff]  ;;  %s438_s7 = smov 32  }
   0xf   :  { %159 = vmatprep.subr.mxu0 %v437_v0  ;;  %310 = vmatprep.subr.mxu1 %v437_v0  ;;  %v56_v3 = vld [vmem:[%s589_s0 + $0x3] sm:$0xff]  ;;  %v360_v4 = vpack.i.bf16 %v50_v2, %v48_v1  ;;  %v58_v5 = vld [vmem:[%s589_s0 + $0x1b] sm:$0xff]  ;;  %s439_s10 = smov 96   ;;  %v141_v16 = vld [vmem:[#allocation3 + $0x70] sm:$0xff]  ;;  %s440_s17 = smov 64   ;;  %vm112_vm0 = vcmask 261120  }
  0x10   :  { %v52_v6 = vld [vmem:[%s589_s0 + $0x2] sm:$0xff]  ;;  %v54_v7 = vld [vmem:[%s589_s0 + $0x1a] sm:$0xff]  ;;  %v370_v8 = vpack.i.bf16 %v58_v5, %v56_v3  ;;  %v53_v12 = vld [vmem:[%s589_s0 + $0xa] sm:$0xff]  ;;  %vm117_vm1 = vcmask 523264   ;;  %vm122_vm2 = vcmask 785408   ;;  %vm274_vm12 = vcmask 1041409  }
  0x11   :  { %v49_v9 = vld [vmem:[%s589_s0 + $0x9] sm:$0xff]  ;;  %v51_v10 = vld [vmem:[%s589_s0 + $0x21] sm:$0xff]  ;;  %361 = vrot.lane.b32.xlu0 %v360_v4, %s438_s7  ;;  %v365_v11 = vpack.i.bf16 %v54_v7, %v52_v6  ;;  %v137_v24 = vld [vmem:[#allocation3 + $0x50] sm:$0xff] }
  0x12   :  { %371 = vrot.lane.b32.xlu1 %v370_v8, %s439_s10  ;;  %v375_v13 = vpack.i.bf16 %v51_v10, %v49_v9  ;;  %v55_v14 = vld [vmem:[%s589_s0 + $0x22] sm:$0xff]  ;;  %v142_v15 = vld [vmem:[#allocation3 + $0x78] sm:$0xff]  ;;  %v57_v17 = vld [vmem:[%s589_s0 + $0xb] sm:$0xff] }
  0x13   :  { %v59_v18 = vld [vmem:[%s589_s0 + $0x23] sm:$0xff]  ;;  %160 = vmatpush1.msra.mxu0 %v142_v15  ;;  %330 = vmatpush1.msra.mxu1 %v142_v15  ;;  %v380_v19 = vpack.i.bf16 %v55_v14, %v53_v12  ;;  %v138_v23 = vld [vmem:[#allocation3 + $0x58] sm:$0xff]  ;;  %v133_v28 = vld [vmem:[#allocation3 + $0x30] sm:$0xff]  ;;  %v30_v14 = vlaneseq }
  0x14   :  { %161 = vmatprep.subr.mxu0 %v437_v0  ;;  %311 = vmatprep.subr.mxu1 %v437_v0  ;;  %v140_v20 = vld [vmem:[#allocation3 + $0x68] sm:$0xff]  ;;  %v385_v21 = vpack.i.bf16 %v59_v18, %v57_v17  ;;  %v139_v22 = vld [vmem:[#allocation3 + $0x60] sm:$0xff]  ;;  %v134_v27 = vld [vmem:[#allocation3 + $0x38] sm:$0xff] }
  0x15   :  { %366 = vrot.lane.b32.xlu0 %v365_v11, %s440_s17  ;;  %162 = vmatpush1.msra.mxu0 %v141_v16  ;;  %v136_v25 = vld [vmem:[#allocation3 + $0x48] sm:$0xff]  ;;  %v135_v26 = vld [vmem:[#allocation3 + $0x40] sm:$0xff]  ;;  %v130_v31 = vld [vmem:[#allocation3 + $0x18] sm:$0xff]  ;;  %v31_v15 = vand.u32 127, %v30_v14 }
  0x16   :  { %376 = vrot.lane.b32.xlu1 %v375_v13, %s438_s7  ;;  %331 = vmatpush1.msra.mxu1 %v141_v16  ;;  %v132_v29 = vld [vmem:[#allocation3 + $0x28] sm:$0xff]  ;;  %v131_v30 = vld [vmem:[#allocation3 + $0x20] sm:$0xff]  ;;  %v129_v32 = vld [vmem:[#allocation3 + $0x10] sm:$0xff]  ;;  %v441_v13 = vmov -inf   ;;  %v442_v16 = vmov 16   ;;  %s443_s7 = smov [#allocation6]  }
  0x17   :  { %163 = vmatprep.subr.mxu0 %v437_v0  ;;  %312 = vmatprep.subr.mxu1 %v437_v0  ;;  %v128_v33 = vld [vmem:[#allocation3 + $0x8] sm:$0xff]  ;;  %v127_v34 = vld [vmem:[#allocation3] sm:$0xff]  ;;  %v146_v35 = vld [vmem:[#allocation3 + $0x98] sm:$0xff]  ;;  %29 = vst [vmem:[#allocation2] sm:$0x3] %v441_v13  ;;  %vm33_vm3 = vcmp.lt.s32.totalorder %v31_v15, 8 }
  0x18   :  { %164 = vmatpush1.msra.mxu0 %v140_v20  ;;  %332 = vmatpush1.msra.mxu1 %v140_v20  ;;  %v145_v36 = vld [vmem:[#allocation3 + $0x90] sm:$0xff]  ;;  %v144_v37 = vld [vmem:[#allocation3 + $0x88] sm:$0xff]  ;;  %v143_v38 = vld [vmem:[#allocation3 + $0x80] sm:$0xff]  ;;  %vm36_vm4 = vcmp.ge.s32.totalorder %v31_v15, 8  ;;  %vm37_vm5 = vcmp.lt.s32.totalorder %v31_v15, 16  ;;  %v35_v17 = vsel %vm33_vm3, 14, %v442_v16 }
  0x19   :  { %381 = vrot.lane.b32.xlu0 %v380_v19, %s440_s17  ;;  %165 = vmatprep.subr.mxu0 %v437_v0  ;;  %v60_v39 = vld [vmem:[%s589_s0 + $0x4] sm:$0xff]  ;;  %v62_v40 = vld [vmem:[%s589_s0 + $0x1c] sm:$0xff]  ;;  %v61_v57 = vld [vmem:[%s589_s0 + $0xc] sm:$0xff]  ;;  %vm40_vm7 = vcmp.ge.s32.totalorder %v31_v15, 16  ;;  %vm41_vm8 = vcmp.lt.s32.totalorder %v31_v15, 24  ;;  %v245_v19 = vshrl.u32 %v30_v14, 7 }
  0x1a   :  { %386 = vrot.lane.b32.xlu1 %v385_v21, %s439_s10  ;;  %313 = vmatprep.subr.mxu1 %v437_v0  ;;  %v44_v45 = vld [vmem:[%s589_s0] sm:$0xff]  ;;  %v46_v46 = vld [vmem:[%s589_s0 + $0x18] sm:$0xff]  ;;  %v45_v61 = vld [vmem:[%s589_s0 + $0x8] sm:$0xff]  ;;  %s296_s8 = sshll.u32 %s443_s7, 4  ;;  %s297_s8 = int_to_ptr.vmem [resolvable:$true] %s296_s8 }
  0x1b   :  { %166 = vmatpush1.msra.mxu0 %v139_v22  ;;  %333 = vmatpush1.msra.mxu1 %v139_v22  ;;  %v63_v60 = vld [vmem:[%s589_s0 + $0x24] sm:$0xff]  ;;  %vm38_vm6 = vmand %vm36_vm4, %vm37_vm5  ;;  %v246_v20 = vadd.s32 8, %v245_v19  ;;  %s410_s9 = scalar_lea.vmem %s297_s8, 32  ;;  %p415_p6 = scmp.lt.s32.totalorder %s297_s8, %s297_s8 }
  0x1c   :  { %167 = vmatprep.subr.mxu0 %v437_v0  ;;  %314 = vmatprep.subr.mxu1 %v437_v0  ;;  %v47_v62 = vld [vmem:[%s589_s0 + $0x20] sm:$0xff]  ;;  %v39_v18 = vsel %vm38_vm6, 13, %v35_v17  ;;  %vm42_vm9 = vmand %vm40_vm7, %vm41_vm8  ;;  %p411_p5 = scmp.ne.s32.totalorder %s297_s8, %s410_s9  ;;  %p416_p7 = scmp.lt.s32.totalorder %s410_s9, %s410_s9 }
  0x1d   :  { %168 = vmatpush1.msra.mxu0 %v138_v23  ;;  %334 = vmatpush1.msra.mxu1 %v138_v23  ;;  %v43_v21 = vsel %vm42_vm9, 12, %v39_v18 }
  0x1e   :  { %169 = vmatprep.subr.mxu0 %v437_v0  ;;  %315 = vmatprep.subr.mxu1 %v437_v0  ;;  %vm247_vm10 = vcmp.lt.s32.totalorder %v245_v19, %v43_v21  ;;  %vm248_vm11 = vcmp.lt.s32.totalorder %v246_v20, %v43_v21  ;;  %p417_p8 = por %p416_p7, %p415_p6 }
  0x1f   :  { %170 = vmatpush1.msra.mxu0 %v137_v24  ;;  %335 = vmatpush1.msra.mxu1 %v137_v24 }
  0x20   :  { %171 = vmatprep.subr.mxu0 %v437_v0  ;;  %316 = vmatprep.subr.mxu1 %v437_v0  ;;  %p418_p9 = pnand %p417_p8, %p411_p5 }
  0x21   :  { %172 = vmatpush1.msra.mxu0 %v136_v25  ;;  %336 = vmatpush1.msra.mxu1 %v136_v25 }
  0x22   :  { %173 = vmatprep.subr.mxu0 %v437_v0  ;;  %317 = vmatprep.subr.mxu1 %v437_v0 }
  0x23   :  { %174 = vmatpush1.msra.mxu0 %v135_v26  ;;  %337 = vmatpush1.msra.mxu1 %v135_v26 }
  0x24   :  { %175 = vmatprep.subr.mxu0 %v437_v0  ;;  %318 = vmatprep.subr.mxu1 %v437_v0 }
  0x25   :  { %176 = vmatpush1.msra.mxu0 %v134_v27  ;;  %338 = vmatpush1.msra.mxu1 %v134_v27 }
  0x26   :  { %177 = vmatprep.subr.mxu0 %v437_v0  ;;  %319 = vmatprep.subr.mxu1 %v437_v0 }
  0x27   :  { %178 = vmatpush1.msra.mxu0 %v133_v28  ;;  %339 = vmatpush1.msra.mxu1 %v133_v28 }
  0x28   :  { %179 = vmatprep.subr.mxu0 %v437_v0  ;;  %320 = vmatprep.subr.mxu1 %v437_v0 }
  0x29   :  { %180 = vmatpush1.msra.mxu0 %v132_v29  ;;  %340 = vmatpush1.msra.mxu1 %v132_v29 }
  0x2a   :  { %181 = vmatprep.subr.mxu0 %v437_v0  ;;  %321 = vmatprep.subr.mxu1 %v437_v0 }
  0x2b   :  { %182 = vmatpush1.msra.mxu0 %v131_v30  ;;  %341 = vmatpush1.msra.mxu1 %v131_v30 }
  0x2c   :  { %183 = vmatprep.subr.mxu0 %v437_v0  ;;  %322 = vmatprep.subr.mxu1 %v437_v0 }
  0x2d   :  { %184 = vmatpush1.msra.mxu0 %v130_v31  ;;  %342 = vmatpush1.msra.mxu1 %v130_v31 }
  0x2e   :  { %185 = vmatprep.subr.mxu0 %v437_v0  ;;  %323 = vmatprep.subr.mxu1 %v437_v0 }
  0x2f   :  { %186 = vmatpush1.msra.mxu0 %v129_v32  ;;  %343 = vmatpush1.msra.mxu1 %v129_v32 }
  0x30   :  { %187 = vmatprep.subr.mxu0 %v437_v0  ;;  %324 = vmatprep.subr.mxu1 %v437_v0 }
  0x31   :  { %188 = vmatpush1.msra.mxu0 %v128_v33  ;;  %344 = vmatpush1.msra.mxu1 %v128_v33 }
  0x32   :  { %189 = vmatprep.subr.mxu0 %v437_v0  ;;  %325 = vmatprep.subr.mxu1 %v437_v0 }
  0x33   :  { %190 = vmatpush1.msra.mxu0 %v127_v34  ;;  %345 = vmatpush1.msra.mxu1 %v127_v34 }
  0x34   :  { %215 = vmatprep.subr.mxu0 %v437_v0  ;;  %326 = vmatprep.subr.mxu1 %v437_v0 }
  0x35   :  { %216 = vmatpush2.msra.mxu0 %v146_v35  ;;  %346 = vmatpush2.msra.mxu1 %v146_v35 }
  0x36   :  { %217 = vmatprep.subr.mxu0 %v437_v0  ;;  %327 = vmatprep.subr.mxu1 %v437_v0 }
  0x37   :  { %218 = vmatpush2.msra.mxu0 %v145_v36  ;;  %347 = vmatpush2.msra.mxu1 %v145_v36 }
  0x38   :  { %219 = vmatprep.subr.mxu0 %v437_v0  ;;  %328 = vmatprep.subr.mxu1 %v437_v0 }
  0x39   :  { %220 = vmatpush2.msra.mxu0 %v144_v37  ;;  %348 = vmatpush2.msra.mxu1 %v144_v37 }
  0x3a   :  { %221 = vmatprep.subr.mxu0 %v437_v0  ;;  %329 = vmatprep.subr.mxu1 %v437_v0 }
  0x3b   :  { %222 = vmatpush2.msra.mxu0 %v143_v38  ;;  %349 = vmatpush2.msra.mxu1 %v143_v38 }
  0x3c   :  { %305 = vmatprep.mubr.msk.f32.mxu0 %vm112_vm0, %v60_v39  ;;  %307 = vmatprep.mubr.msk.f32.mxu1 %vm112_vm0, %v62_v40 }
  0x83   :  { %v362_v41 = vpop.permute.xlu0 %361 }
  0x84   :  { %v372_v42 = vpop.permute.xlu1 %371  ;;  %v364_v43 = vunpack.i.h.bf16 %v362_v41  ;;  %v363_v44 = vunpack.i.l.bf16 %v362_v41 }
  0x85   :  { %v374_v48 = vunpack.i.h.bf16 %v372_v42  ;;  %v373_v49 = vunpack.i.l.bf16 %v372_v42 }
  0x86   :  { %v113_v55 = vsel %vm112_vm0, %v44_v45, %v363_v44  ;;  %v115_v56 = vsel %vm112_vm0, %v46_v46, %v364_v43 }
  0x87   :  { %v367_v47 = vpop.permute.xlu0 %366 }
  0x88   :  { %v369_v50 = vunpack.i.h.bf16 %v367_v47  ;;  %v368_v51 = vunpack.i.l.bf16 %v367_v47  ;;  %v377_v52 = vpop.permute.xlu1 %376  ;;  %v257_v47 = vld [vmem:[#allocation2] sm:$0x3] }
  0x89   :  { %v379_v53 = vunpack.i.h.bf16 %v377_v52  ;;  %v378_v54 = vunpack.i.l.bf16 %v377_v52 }
  0x8a   :  { %v118_v58 = vsel %vm117_vm1, %v113_v55, %v368_v51  ;;  %v120_v59 = vsel %vm117_vm1, %v115_v56, %v369_v50  ;;  %v309_v51 = vld [vmem:[%s591_s2] ss:$0 sm:$0xff] }
  0x8b   :  { %v382_v63 = vpop.permute.xlu0 %381  ;;  %v123_v0 = vsel %vm122_vm2, %v118_v58, %v373_v49  ;;  %v125_v1 = vsel %vm122_vm2, %v120_v59, %v374_v48  ;;  %v114_v7 = vsel %vm112_vm0, %v45_v61, %v378_v54  ;;  %v116_v8 = vsel %vm112_vm0, %v47_v62, %v379_v53 }
  0x8c   :  { %v384_v2 = vunpack.i.h.bf16 %v382_v63  ;;  %v383_v3 = vunpack.i.l.bf16 %v382_v63  ;;  %v387_v4 = vpop.permute.xlu1 %386  ;;  %224 = vmatmul.mubr.f32.vlgmr.msra.gmra.mxu0 %v123_v0  ;;  %234 = vmatmul.mubr.f32.vlgmr.msra.gmra.mxu1 %v125_v1 }
  0x8d   :  { %v389_v5 = vunpack.i.h.bf16 %v387_v4  ;;  %v388_v6 = vunpack.i.l.bf16 %v387_v4  ;;  %306 = vmatprep.mubr.msk.f32.mxu0 %vm112_vm0, %v61_v57  ;;  %308 = vmatprep.mubr.msk.f32.mxu1 %vm112_vm0, %v63_v60 }
  0x8e   :  { %v119_v9 = vsel %vm117_vm1, %v114_v7, %v383_v3  ;;  %v121_v10 = vsel %vm117_vm1, %v116_v8, %v384_v2 }
  0x8f   :  { %v124_v11 = vsel %vm122_vm2, %v119_v9, %v388_v6  ;;  %v126_v12 = vsel %vm122_vm2, %v121_v10, %v389_v5 }
  0x90   :  { %229 = vmatmul.mubr.f32.gmra.mxu0 %v124_v11  ;;  %239 = vmatmul.mubr.f32.gmra.mxu1 %v126_v12 }
 0x14c   :  { %v225_v22 = vpop.f32.mrf.mxu0  ;;  %v235_v23 = vpop.f32.mrf.mxu1 }
 0x14d   :  { %v253_v28 = vsel %vm247_vm10, %v225_v22, -inf  ;;  %v255_v29 = vsel %vm247_vm10, %v235_v23, -inf }
 0x14e   :  { %v227_v24 = vpop.f32.mrf.mxu0  ;;  %v237_v25 = vpop.f32.mrf.mxu1 }
 0x150   :  { %v230_v26 = vpop.f32.mrf.mxu0  ;;  %v240_v27 = vpop.f32.mrf.mxu1 }
 0x151   :  { %v254_v30 = vsel %vm248_vm11, %v230_v26, -inf  ;;  %v256_v31 = vsel %vm248_vm11, %v240_v27, -inf }
 0x152   :  { %v258_v32 = vmax.f32 %v253_v28, %v254_v30  ;;  %v265_v33 = vmax.f32 %v255_v29, %v256_v31  ;;  %v232_v34 = vpop.f32.mrf.mxu0  ;;  %v242_v35 = vpop.f32.mrf.mxu1 }
 0x154   :  { %v259_v36 = vrot.slane %v258_v32, 4  ;;  %v266_v37 = vrot.slane %v265_v33, 4 }
 0x156   :  { %v260_v38 = vmax.f32 %v258_v32, %v259_v36  ;;  %v267_v39 = vmax.f32 %v265_v33, %v266_v37 }
 0x158   :  { %v261_v40 = vrot.slane %v260_v38, 2  ;;  %v268_v41 = vrot.slane %v267_v39, 2 }
 0x15a   :  { %v262_v42 = vmax.f32 %v260_v38, %v261_v40  ;;  %v269_v43 = vmax.f32 %v267_v39, %v268_v41 }
 0x15c   :  { %v263_v44 = vrot.slane %v262_v42, 1  ;;  %v270_v45 = vrot.slane %v269_v43, 1 }
 0x15e   :  { %v264_v46 = vmax.f32 %v262_v42, %v263_v44  ;;  %v271_v48 = vmax.f32 %v269_v43, %v270_v45 }
 0x160   :  { %v275_v49 = vsel %vm274_vm12, %v271_v48, %v264_v46 }
 0x161   :  { %v277_v50 = vmax.f32 %v257_v47, %v275_v49 }
 0x163   :  { %278 = vst [vmem:[#allocation2] sm:$0x3] %v277_v50 }
 0x16a   :  { %v279_v52 = vld [vmem:[#allocation2] sm:$0x3] }
 0x16b   :  { %v287_v53 = vadd.f32 %v309_v51, %v279_v52 }
 0x16d   :  { %v288_v54 = vmax.f32 %v287_v53, 0.0 }
 0x16f   :  { %289 = vst [vmem:[#allocation6] sm:$0x3] %v288_v54 }
 0x170   :  { %421 = shalt.err (!%p418_p9)
}
 0x171   :  { %299 = dma.vmem_to_hbm [thread:$0]  %s297_s8, 32, %s592_s3, [#allocation5]  }
 0x172   :  { %432 = dma.done.wait [#allocation5], 32  }
 0x173   :  { %433 = vsyncadd [#allocation5], 4294967264 }
 0x174   :  { %303 = vsyncpa [#allocation4], 1 }
 0x175   :  { %304 = vsyncpa [#allocation5], 1 }

</bundles_post_ra>
